<compile_context>
chip_gen: v7x
topology: tpu7x:2x2x1
jax: 0.10.0
libtpu: 0.0.40
codegen_flags: <defaults>
</compile_context>

<pallas_src>
import jax
import jax.numpy as jnp
from jax import lax
from jax.experimental import pallas as pl
from jax.experimental.pallas import tpu as pltpu


# ----------------------------- kernel ------------------------------------ #


def _lstm_classifier_kernel(x_ref, w_ih_ref, w_hh_ref, b_ref,
                            w_cls_ref, b_cls_ref, out_ref,
                            gates_scr, h_scr, c_scr):
    """One grid step = one (batch block, time chunk).

    x_ref      : (t_blk, b_blk, D)  time-major input chunk (streamed)
    w_ih_ref   : (D, 4H)            input->gates weights (gate order i,f,g,o)
    w_hh_ref   : (H, 4H)            hidden->gates weights
    b_ref      : (1, 4H)            combined bias (bias_ih + bias_hh)
    w_cls_ref  : (H, Oc)            classifier weights (O padded to 128 lanes)
    b_cls_ref  : (1, Oc)            classifier bias
    out_ref    : (b_blk, Oc)        logits (written once, at the last chunk)
    gates_scr  : (t_blk*b_blk, 4H)  per-chunk precomputed x-gates (VMEM)
    h_scr/c_scr: (b_blk, H)         state carried across time chunks (VMEM)
    """
    t_blk, b_blk, D = x_ref.shape
    H, four_h = w_hh_ref.shape

    t_idx = pl.program_id(1)
    nt = pl.num_programs(1)

    # h_0 = c_0 = 0 (PyTorch default); re-init at the first time chunk of
    # every batch block (time axis is the innermost grid axis).
    @pl.when(t_idx == 0)
    def _():
        h_scr[...] = jnp.zeros_like(h_scr)
        c_scr[...] = jnp.zeros_like(c_scr)

    # Hoist weight / bias loads out of the recurrence (once per chunk).
    w_hh = w_hh_ref[...]
    b = b_ref[...]

    # ---- Phase 1 (time-parallel): input projection for the whole chunk as
    # one batched MXU matmul, off the serial dependence chain. ----
    rows = t_blk * b_blk
    x_chunk = x_ref[...].reshape(rows, D)           # sublane-aligned merge
    gates_scr[...] = (
        jnp.dot(x_chunk, w_ih_ref[...], preferred_element_type=jnp.float32)
        + b
    )

    # ---- Phase 2 (serial): recurrence. h/c live in vregs as loop carries;
    # per step: one small (b_blk,H)@(H,4H) matmul + elementwise. ----
    def step(t, carry):
        h, c = carry
        r0 = pl.multiple_of(t * b_blk, b_blk)       # aligned sublane offset
        z = (gates_scr[pl.ds(r0, b_blk), :]
             + jnp.dot(h, w_hh, preferred_element_type=jnp.float32))

        i_g = jax.nn.sigmoid(z[:, 0 * H:1 * H])
        f_g = jax.nn.sigmoid(z[:, 1 * H:2 * H])
        g_g = jnp.tanh(z[:, 2 * H:3 * H])
        o_g = jax.nn.sigmoid(z[:, 3 * H:4 * H])

        c_new = f_g * c + i_g * g_g
        h_new = o_g * jnp.tanh(c_new)
        return h_new, c_new

    h0 = h_scr[...]
    c0 = c_scr[...]
    h_fin, c_fin = lax.fori_loop(0, t_blk, step, (h0, c0), unroll=True)

    # Scratch touched only once per chunk.
    h_scr[...] = h_fin
    c_scr[...] = c_fin

    # classifier(h_n[-1]) — single lane-dense store at the last time chunk.
    @pl.when(t_idx == nt - 1)
    def _():
        out_ref[...] = (
            jnp.dot(h_fin, w_cls_ref[...], preferred_element_type=jnp.float32)
            + b_cls_ref[...]
        )


# ----------------------------- wrapper ----------------------------------- #


def _round_up(n, m):
    return ((n + m - 1) // m) * m


def _largest_divisor_leq(n, cap):
    for d in range(min(n, cap), 0, -1):
        if n % d == 0:
            return d
    return 1


def _pick_batch_block(bp, cap=128):
    # bp is a multiple of 8; pick the largest multiple of 8 <= cap dividing bp.
    best = 8
    d = 16
    while d <= min(bp, cap):
        if bp % d == 0:
            best = d
        d += 8
    return best


def netflow_lstm_forward(x, params, *, t_block=4):
    """x: (B, T, D) batch_first float32 (like the PyTorch module). Returns (B, O)."""
    B, T, D = x.shape
    H, four_h = params["w_hh"].shape
    O = params["w_cls"].shape[1]

    # Pad batch to the 8-sublane granularity and the classifier output to a
    # full 128-lane width; compute on padded shapes, slice at the end.
    Bp = _round_up(B, 8)
    Oc = _round_up(O, 128)

    x_p = jnp.pad(x, ((0, Bp - B), (0, 0), (0, 0)))
    x_tm = jnp.transpose(x_p, (1, 0, 2))            # (T, Bp, D) time-major

    w_cls_p = jnp.pad(params["w_cls"], ((0, 0), (0, Oc - O)))
    b_cls_p = jnp.pad(params["b_cls"], ((0, 0), (0, Oc - O)))

    # Chunking: time chunk must divide T; batch block is a multiple of 8.
    t_blk = _largest_divisor_leq(T, t_block)
    b_blk = _pick_batch_block(Bp)
    nt = T // t_blk
    nb = Bp // b_blk

    out = pl.pallas_call(
        _lstm_classifier_kernel,
        out_shape=jax.ShapeDtypeStruct((Bp, Oc), jnp.float32),
        grid=(nb, nt),
        in_specs=[
            # streamed input chunk (double-buffered by Pallas)
            pl.BlockSpec((t_blk, b_blk, D), lambda bI, tI: (tI, bI, 0)),
            # weights / biases: grid-constant -> stay VMEM resident
            pl.BlockSpec((D, four_h), lambda bI, tI: (0, 0)),
            pl.BlockSpec((H, four_h), lambda bI, tI: (0, 0)),
            pl.BlockSpec((1, four_h), lambda bI, tI: (0, 0)),
            pl.BlockSpec((H, Oc), lambda bI, tI: (0, 0)),
            pl.BlockSpec((1, Oc), lambda bI, tI: (0, 0)),
        ],
        out_specs=pl.BlockSpec((b_blk, Oc), lambda bI, tI: (bI, 0)),
        scratch_shapes=[
            pltpu.VMEM((t_blk * b_blk, four_h), jnp.float32),  # chunk gates
            pltpu.VMEM((b_blk, H), jnp.float32),               # h state
            pltpu.VMEM((b_blk, H), jnp.float32),               # c state
        ],
        compiler_params=pltpu.CompilerParams(
            # batch axis parallel (both TCs on v7x), time axis sequential
            dimension_semantics=("parallel", "arbitrary"),
            # explicit budget with headroom for v7x's 64 MiB VMEM
            vmem_limit_bytes=32 * 1024 * 1024,
        ),
    )(x_tm, params["w_ih"], params["w_hh"], params["b"], w_cls_p, b_cls_p)

    return out[:B, :O]


# -------------------------- params / reference ---------------------------- #


def init_params(key, input_dim, hidden_dim, output_dim):
    """Deterministic init matching PyTorch shapes (uniform +-1/sqrt(H))."""
    ks = jax.random.split(key, 6)
    k = 1.0 / jnp.sqrt(hidden_dim)
    u = lambda kk, shape: jax.random.uniform(kk, shape, jnp.float32, -k, k)

    # PyTorch stores weight_ih_l0 as (4H, D); we keep (D, 4H) so matmuls are x @ W.
    w_ih = u(ks[0], (4 * hidden_dim, input_dim)).T
    w_hh = u(ks[1], (4 * hidden_dim, hidden_dim)).T
    b_ih = u(ks[2], (4 * hidden_dim,))
    b_hh = u(ks[3], (4 * hidden_dim,))
    w_cls = u(ks[4], (output_dim, hidden_dim)).T
    b_cls = u(ks[5], (output_dim,))

    return {
        "w_ih": jnp.asarray(w_ih, jnp.float32),
        "w_hh": jnp.asarray(w_hh, jnp.float32),
        "b": (b_ih + b_hh).reshape(1, 4 * hidden_dim).astype(jnp.float32),
        "w_cls": jnp.asarray(w_cls, jnp.float32),
        "b_cls": b_cls.reshape(1, output_dim).astype(jnp.float32),
    }


def _reference_forward(x, params):
    """Pure-JAX reference of the same LSTM + Linear (for correctness check)."""
    B, T, D = x.shape
    H = params["w_hh"].shape[0]
    h = jnp.zeros((B, H), jnp.float32)
    c = jnp.zeros((B, H), jnp.float32)
    for t in range(T):
        gates = x[:, t, :] @ params["w_ih"] + h @ params["w_hh"] + params["b"]
        i_g = jax.nn.sigmoid(gates[:, 0 * H:1 * H])
        f_g = jax.nn.sigmoid(gates[:, 1 * H:2 * H])
        g_g = jnp.tanh(gates[:, 2 * H:3 * H])
        o_g = jax.nn.sigmoid(gates[:, 3 * H:4 * H])
        c = f_g * c + i_g * g_g
        h = o_g * jnp.tanh(c)
    return h @ params["w_cls"] + params["b_cls"]


if __name__ == "__main__":
    batch, seq, input_dim, hidden_dim, output_dim = 2, 8, 16, 32, 4

    key = jax.random.PRNGKey(0)
    k_x, k_p = jax.random.split(key)
    x = jax.random.normal(k_x, (batch, seq, input_dim), jnp.float32)
    params = init_params(k_p, input_dim, hidden_dim, output_dim)

    out = netflow_lstm_forward(x, params)           # t_block=4 -> 2 time chunks
    out = jax.block_until_ready(out)

    ref = _reference_forward(x, params)
    assert out.shape == (batch, output_dim)
    assert jnp.allclose(out, ref, atol=1e-5, rtol=1e-5)

    print("KERNEL_OK")
</pallas_src>

<mosaic_0001>
module attributes {stable_mosaic.version = 11 : i64} {
  func.func @_lstm_classifier_kernel(%arg0: i32, %arg1: i32, %arg2: memref<4x8x16xf32, #tpu.memory_space<vmem>>, %arg3: memref<16x128xf32, #tpu.memory_space<vmem>>, %arg4: memref<32x128xf32, #tpu.memory_space<vmem>>, %arg5: memref<1x128xf32, #tpu.memory_space<vmem>>, %arg6: memref<32x128xf32, #tpu.memory_space<vmem>>, %arg7: memref<1x128xf32, #tpu.memory_space<vmem>>, %arg8: memref<8x128xf32, #tpu.memory_space<vmem>>, %arg9: memref<32x128xf32, #tpu.memory_space<vmem>>, %arg10: memref<8x32xf32, #tpu.memory_space<vmem>>, %arg11: memref<8x32xf32, #tpu.memory_space<vmem>>) attributes {dimension_semantics = [#tpu.dimension_semantics<parallel>, #tpu.dimension_semantics<arbitrary>], iteration_bounds = array<i64: 1, 2>, scalar_prefetch = 0 : i64, scratch_operands = 3 : i64, tpu.core_type = #tpu.core_type<tc>, window_params = [{transform_indices = @transform_0, window_bounds = array<i64: 4, 8, 16>}, {pipeline_mode = #tpu.pipeline_mode<synchronous>, transform_indices = @transform_1, window_bounds = array<i64: 16, 128>}, {pipeline_mode = #tpu.pipeline_mode<synchronous>, transform_indices = @transform_2, window_bounds = array<i64: 32, 128>}, {pipeline_mode = #tpu.pipeline_mode<synchronous>, transform_indices = @transform_3, window_bounds = array<i64: 1, 128>}, {pipeline_mode = #tpu.pipeline_mode<synchronous>, transform_indices = @transform_4, window_bounds = array<i64: 32, 128>}, {pipeline_mode = #tpu.pipeline_mode<synchronous>, transform_indices = @transform_5, window_bounds = array<i64: 1, 128>}, {transform_indices = @transform_6, window_bounds = array<i64: 8, 128>}]} {
    %c0_i32 = arith.constant 0 : i32
    %0 = arith.cmpi eq, %arg1, %c0_i32 : i32
    %1 = arith.extui %0 : i1 to i32
    %c0_i32_0 = arith.constant 0 : i32
    %2 = arith.cmpi ne, %1, %c0_i32_0 : i32
    scf.if %2 {
      %cst_45 = arith.constant 0.000000e+00 : f32
      %143 = vector.broadcast %cst_45 : f32 to vector<8x32xf32>
      %c0_46 = arith.constant 0 : index
      %c0_47 = arith.constant 0 : index
      %144 = vector.load %arg10[%c0_46, %c0_47] : memref<8x32xf32, #tpu.memory_space<vmem>>, vector<8x32xf32>
      tpu.vector_store %arg10[%c0_46, %c0_47], %143 {strides = array<i32>} : memref<8x32xf32, #tpu.memory_space<vmem>>, vector<8x32xf32>,
      %cst_48 = arith.constant 0.000000e+00 : f32
      %145 = vector.broadcast %cst_48 : f32 to vector<8x32xf32>
      %c0_49 = arith.constant 0 : index
      %c0_50 = arith.constant 0 : index
      %146 = vector.load %arg11[%c0_49, %c0_50] : memref<8x32xf32, #tpu.memory_space<vmem>>, vector<8x32xf32>
      tpu.vector_store %arg11[%c0_49, %c0_50], %145 {strides = array<i32>} : memref<8x32xf32, #tpu.memory_space<vmem>>, vector<8x32xf32>,
    } else {
    }
    %c0 = arith.constant 0 : index
    %c0_1 = arith.constant 0 : index
    %3 = vector.load %arg4[%c0, %c0_1] : memref<32x128xf32, #tpu.memory_space<vmem>>, vector<32x128xf32>
    %c0_2 = arith.constant 0 : index
    %c0_3 = arith.constant 0 : index
    %4 = vector.load %arg5[%c0_2, %c0_3] : memref<1x128xf32, #tpu.memory_space<vmem>>, vector<1x128xf32>
    %c0_4 = arith.constant 0 : index
    %c0_5 = arith.constant 0 : index
    %c0_6 = arith.constant 0 : index
    %5 = vector.load %arg2[%c0_4, %c0_5, %c0_6] : memref<4x8x16xf32, #tpu.memory_space<vmem>>, vector<4x8x16xf32>
    %6 = vector.shape_cast %5 : vector<4x8x16xf32> to vector<32x16xf32>
    %c0_7 = arith.constant 0 : index
    %c0_8 = arith.constant 0 : index
    %7 = vector.load %arg3[%c0_7, %c0_8] : memref<16x128xf32, #tpu.memory_space<vmem>>, vector<16x128xf32>
    %cst = arith.constant dense<0.000000e+00> : vector<32x128xf32>
    %8 = tpu.matmul %6, %7, %cst {dimension_numbers = #tpu.dot_dimension_numbers<[1], [0], [0], [1], [0, 0, 1, 1], [], []>} : vector<32x16xf32>, vector<16x128xf32>, vector<32x128xf32> -> vector<32x128xf32>
    %9 = vector.broadcast %4 : vector<1x128xf32> to vector<32x128xf32>
    %10 = arith.addf %8, %9 : vector<32x128xf32>
    %c0_9 = arith.constant 0 : index
    %c0_10 = arith.constant 0 : index
    %11 = vector.load %arg9[%c0_9, %c0_10] : memref<32x128xf32, #tpu.memory_space<vmem>>, vector<32x128xf32>
    tpu.vector_store %arg9[%c0_9, %c0_10], %10 {strides = array<i32>} : memref<32x128xf32, #tpu.memory_space<vmem>>, vector<32x128xf32>,
    %c0_11 = arith.constant 0 : index
    %c0_12 = arith.constant 0 : index
    %12 = vector.load %arg10[%c0_11, %c0_12] : memref<8x32xf32, #tpu.memory_space<vmem>>, vector<8x32xf32>
    %c0_13 = arith.constant 0 : index
    %c0_14 = arith.constant 0 : index
    %13 = vector.load %arg11[%c0_13, %c0_14] : memref<8x32xf32, #tpu.memory_space<vmem>>, vector<8x32xf32>
    %c0_i32_15 = arith.constant 0 : i32
    %c8_i32 = arith.constant 8 : i32
    %14 = arith.muli %c0_i32_15, %c8_i32 : i32
    %15 = tpu.assume_multiple %14, 8 : i32
    %16 = arith.index_cast %15 : i32 to index
    %c0_16 = arith.constant 0 : index
    %17 = vector.load %arg9[%16, %c0_16] : memref<32x128xf32, #tpu.memory_space<vmem>>, vector<8x128xf32>
    %cst_17 = arith.constant dense<0.000000e+00> : vector<8x128xf32>
    %18 = tpu.matmul %12, %3, %cst_17 {dimension_numbers = #tpu.dot_dimension_numbers<[1], [0], [0], [1], [0, 0, 1, 1], [], []>} : vector<8x32xf32>, vector<32x128xf32>, vector<8x128xf32> -> vector<8x128xf32>
    %19 = arith.addf %17, %18 : vector<8x128xf32>
    %20 = vector.extract_strided_slice %19 {offsets = [0, 0], sizes = [8, 32], strides = [1, 1]} : vector<8x128xf32> to vector<8x32xf32>
    %21 = arith.negf %20 : vector<8x32xf32>
    %22 = math.exp %21 : vector<8x32xf32>
    %cst_18 = arith.constant 1.000000e+00 : f32
    %23 = vector.broadcast %cst_18 : f32 to vector<8x32xf32>
    %24 = arith.addf %23, %22 : vector<8x32xf32>
    %25 = arith.divf %23, %24 : vector<8x32xf32>
    %26 = vector.extract_strided_slice %19 {offsets = [0, 32], sizes = [8, 32], strides = [1, 1]} : vector<8x128xf32> to vector<8x32xf32>
    %27 = arith.negf %26 : vector<8x32xf32>
    %28 = math.exp %27 : vector<8x32xf32>
    %cst_19 = arith.constant 1.000000e+00 : f32
    %29 = vector.broadcast %cst_19 : f32 to vector<8x32xf32>
    %30 = arith.addf %29, %28 : vector<8x32xf32>
    %31 = arith.divf %29, %30 : vector<8x32xf32>
    %32 = vector.extract_strided_slice %19 {offsets = [0, 64], sizes = [8, 32], strides = [1, 1]} : vector<8x128xf32> to vector<8x32xf32>
    %33 = math.tanh %32 : vector<8x32xf32>
    %34 = vector.extract_strided_slice %19 {offsets = [0, 96], sizes = [8, 32], strides = [1, 1]} : vector<8x128xf32> to vector<8x32xf32>
    %35 = arith.negf %34 : vector<8x32xf32>
    %36 = math.exp %35 : vector<8x32xf32>
    %cst_20 = arith.constant 1.000000e+00 : f32
    %37 = vector.broadcast %cst_20 : f32 to vector<8x32xf32>
    %38 = arith.addf %37, %36 : vector<8x32xf32>
    %39 = arith.divf %37, %38 : vector<8x32xf32>
    %40 = arith.mulf %31, %13 : vector<8x32xf32>
    %41 = arith.mulf %25, %33 : vector<8x32xf32>
    %42 = arith.addf %40, %41 : vector<8x32xf32>
    %43 = math.tanh %42 : vector<8x32xf32>
    %44 = arith.mulf %39, %43 : vector<8x32xf32>
    %c1_i32 = arith.constant 1 : i32
    %c8_i32_21 = arith.constant 8 : i32
    %45 = arith.muli %c1_i32, %c8_i32_21 : i32
    %46 = tpu.assume_multiple %45, 8 : i32
    %47 = arith.index_cast %46 : i32 to index
    %c0_22 = arith.constant 0 : index
    %48 = vector.load %arg9[%47, %c0_22] : memref<32x128xf32, #tpu.memory_space<vmem>>, vector<8x128xf32>
    %cst_23 = arith.constant dense<0.000000e+00> : vector<8x128xf32>
    %49 = tpu.matmul %44, %3, %cst_23 {dimension_numbers = #tpu.dot_dimension_numbers<[1], [0], [0], [1], [0, 0, 1, 1], [], []>} : vector<8x32xf32>, vector<32x128xf32>, vector<8x128xf32> -> vector<8x128xf32>
    %50 = arith.addf %48, %49 : vector<8x128xf32>
    %51 = vector.extract_strided_slice %50 {offsets = [0, 0], sizes = [8, 32], strides = [1, 1]} : vector<8x128xf32> to vector<8x32xf32>
    %52 = arith.negf %51 : vector<8x32xf32>
    %53 = math.exp %52 : vector<8x32xf32>
    %cst_24 = arith.constant 1.000000e+00 : f32
    %54 = vector.broadcast %cst_24 : f32 to vector<8x32xf32>
    %55 = arith.addf %54, %53 : vector<8x32xf32>
    %56 = arith.divf %54, %55 : vector<8x32xf32>
    %57 = vector.extract_strided_slice %50 {offsets = [0, 32], sizes = [8, 32], strides = [1, 1]} : vector<8x128xf32> to vector<8x32xf32>
    %58 = arith.negf %57 : vector<8x32xf32>
    %59 = math.exp %58 : vector<8x32xf32>
    %cst_25 = arith.constant 1.000000e+00 : f32
    %60 = vector.broadcast %cst_25 : f32 to vector<8x32xf32>
    %61 = arith.addf %60, %59 : vector<8x32xf32>
    %62 = arith.divf %60, %61 : vector<8x32xf32>
    %63 = vector.extract_strided_slice %50 {offsets = [0, 64], sizes = [8, 32], strides = [1, 1]} : vector<8x128xf32> to vector<8x32xf32>
    %64 = math.tanh %63 : vector<8x32xf32>
    %65 = vector.extract_strided_slice %50 {offsets = [0, 96], sizes = [8, 32], strides = [1, 1]} : vector<8x128xf32> to vector<8x32xf32>
    %66 = arith.negf %65 : vector<8x32xf32>
    %67 = math.exp %66 : vector<8x32xf32>
    %cst_26 = arith.constant 1.000000e+00 : f32
    %68 = vector.broadcast %cst_26 : f32 to vector<8x32xf32>
    %69 = arith.addf %68, %67 : vector<8x32xf32>
    %70 = arith.divf %68, %69 : vector<8x32xf32>
    %71 = arith.mulf %62, %42 : vector<8x32xf32>
    %72 = arith.mulf %56, %64 : vector<8x32xf32>
    %73 = arith.addf %71, %72 : vector<8x32xf32>
    %74 = math.tanh %73 : vector<8x32xf32>
    %75 = arith.mulf %70, %74 : vector<8x32xf32>
    %c2_i32 = arith.constant 2 : i32
    %c8_i32_27 = arith.constant 8 : i32
    %76 = arith.muli %c2_i32, %c8_i32_27 : i32
    %77 = tpu.assume_multiple %76, 8 : i32
    %78 = arith.index_cast %77 : i32 to index
    %c0_28 = arith.constant 0 : index
    %79 = vector.load %arg9[%78, %c0_28] : memref<32x128xf32, #tpu.memory_space<vmem>>, vector<8x128xf32>
    %cst_29 = arith.constant dense<0.000000e+00> : vector<8x128xf32>
    %80 = tpu.matmul %75, %3, %cst_29 {dimension_numbers = #tpu.dot_dimension_numbers<[1], [0], [0], [1], [0, 0, 1, 1], [], []>} : vector<8x32xf32>, vector<32x128xf32>, vector<8x128xf32> -> vector<8x128xf32>
    %81 = arith.addf %79, %80 : vector<8x128xf32>
    %82 = vector.extract_strided_slice %81 {offsets = [0, 0], sizes = [8, 32], strides = [1, 1]} : vector<8x128xf32> to vector<8x32xf32>
    %83 = arith.negf %82 : vector<8x32xf32>
    %84 = math.exp %83 : vector<8x32xf32>
    %cst_30 = arith.constant 1.000000e+00 : f32
    %85 = vector.broadcast %cst_30 : f32 to vector<8x32xf32>
    %86 = arith.addf %85, %84 : vector<8x32xf32>
    %87 = arith.divf %85, %86 : vector<8x32xf32>
    %88 = vector.extract_strided_slice %81 {offsets = [0, 32], sizes = [8, 32], strides = [1, 1]} : vector<8x128xf32> to vector<8x32xf32>
    %89 = arith.negf %88 : vector<8x32xf32>
    %90 = math.exp %89 : vector<8x32xf32>
    %cst_31 = arith.constant 1.000000e+00 : f32
    %91 = vector.broadcast %cst_31 : f32 to vector<8x32xf32>
    %92 = arith.addf %91, %90 : vector<8x32xf32>
    %93 = arith.divf %91, %92 : vector<8x32xf32>
    %94 = vector.extract_strided_slice %81 {offsets = [0, 64], sizes = [8, 32], strides = [1, 1]} : vector<8x128xf32> to vector<8x32xf32>
    %95 = math.tanh %94 : vector<8x32xf32>
    %96 = vector.extract_strided_slice %81 {offsets = [0, 96], sizes = [8, 32], strides = [1, 1]} : vector<8x128xf32> to vector<8x32xf32>
    %97 = arith.negf %96 : vector<8x32xf32>
    %98 = math.exp %97 : vector<8x32xf32>
    %cst_32 = arith.constant 1.000000e+00 : f32
    %99 = vector.broadcast %cst_32 : f32 to vector<8x32xf32>
    %100 = arith.addf %99, %98 : vector<8x32xf32>
    %101 = arith.divf %99, %100 : vector<8x32xf32>
    %102 = arith.mulf %93, %73 : vector<8x32xf32>
    %103 = arith.mulf %87, %95 : vector<8x32xf32>
    %104 = arith.addf %102, %103 : vector<8x32xf32>
    %105 = math.tanh %104 : vector<8x32xf32>
    %106 = arith.mulf %101, %105 : vector<8x32xf32>
    %c3_i32 = arith.constant 3 : i32
    %c8_i32_33 = arith.constant 8 : i32
    %107 = arith.muli %c3_i32, %c8_i32_33 : i32
    %108 = tpu.assume_multiple %107, 8 : i32
    %109 = arith.index_cast %108 : i32 to index
    %c0_34 = arith.constant 0 : index
    %110 = vector.load %arg9[%109, %c0_34] : memref<32x128xf32, #tpu.memory_space<vmem>>, vector<8x128xf32>
    %cst_35 = arith.constant dense<0.000000e+00> : vector<8x128xf32>
    %111 = tpu.matmul %106, %3, %cst_35 {dimension_numbers = #tpu.dot_dimension_numbers<[1], [0], [0], [1], [0, 0, 1, 1], [], []>} : vector<8x32xf32>, vector<32x128xf32>, vector<8x128xf32> -> vector<8x128xf32>
    %112 = arith.addf %110, %111 : vector<8x128xf32>
    %113 = vector.extract_strided_slice %112 {offsets = [0, 0], sizes = [8, 32], strides = [1, 1]} : vector<8x128xf32> to vector<8x32xf32>
    %114 = arith.negf %113 : vector<8x32xf32>
    %115 = math.exp %114 : vector<8x32xf32>
    %cst_36 = arith.constant 1.000000e+00 : f32
    %116 = vector.broadcast %cst_36 : f32 to vector<8x32xf32>
    %117 = arith.addf %116, %115 : vector<8x32xf32>
    %118 = arith.divf %116, %117 : vector<8x32xf32>
    %119 = vector.extract_strided_slice %112 {offsets = [0, 32], sizes = [8, 32], strides = [1, 1]} : vector<8x128xf32> to vector<8x32xf32>
    %120 = arith.negf %119 : vector<8x32xf32>
    %121 = math.exp %120 : vector<8x32xf32>
    %cst_37 = arith.constant 1.000000e+00 : f32
    %122 = vector.broadcast %cst_37 : f32 to vector<8x32xf32>
    %123 = arith.addf %122, %121 : vector<8x32xf32>
    %124 = arith.divf %122, %123 : vector<8x32xf32>
    %125 = vector.extract_strided_slice %112 {offsets = [0, 64], sizes = [8, 32], strides = [1, 1]} : vector<8x128xf32> to vector<8x32xf32>
    %126 = math.tanh %125 : vector<8x32xf32>
    %127 = vector.extract_strided_slice %112 {offsets = [0, 96], sizes = [8, 32], strides = [1, 1]} : vector<8x128xf32> to vector<8x32xf32>
    %128 = arith.negf %127 : vector<8x32xf32>
    %129 = math.exp %128 : vector<8x32xf32>
    %cst_38 = arith.constant 1.000000e+00 : f32
    %130 = vector.broadcast %cst_38 : f32 to vector<8x32xf32>
    %131 = arith.addf %130, %129 : vector<8x32xf32>
    %132 = arith.divf %130, %131 : vector<8x32xf32>
    %133 = arith.mulf %124, %104 : vector<8x32xf32>
    %134 = arith.mulf %118, %126 : vector<8x32xf32>
    %135 = arith.addf %133, %134 : vector<8x32xf32>
    %136 = math.tanh %135 : vector<8x32xf32>
    %137 = arith.mulf %132, %136 : vector<8x32xf32>
    %c4_i32 = arith.constant 4 : i32
    %c0_39 = arith.constant 0 : index
    %c0_40 = arith.constant 0 : index
    %138 = vector.load %arg10[%c0_39, %c0_40] : memref<8x32xf32, #tpu.memory_space<vmem>>, vector<8x32xf32>
    tpu.vector_store %arg10[%c0_39, %c0_40], %137 {strides = array<i32>} : memref<8x32xf32, #tpu.memory_space<vmem>>, vector<8x32xf32>,
    %c0_41 = arith.constant 0 : index
    %c0_42 = arith.constant 0 : index
    %139 = vector.load %arg11[%c0_41, %c0_42] : memref<8x32xf32, #tpu.memory_space<vmem>>, vector<8x32xf32>
    tpu.vector_store %arg11[%c0_41, %c0_42], %135 {strides = array<i32>} : memref<8x32xf32, #tpu.memory_space<vmem>>, vector<8x32xf32>,
    %c1_i32_43 = arith.constant 1 : i32
    %140 = arith.cmpi eq, %arg1, %c1_i32_43 : i32
    %141 = arith.extui %140 : i1 to i32
    %c0_i32_44 = arith.constant 0 : i32
    %142 = arith.cmpi ne, %141, %c0_i32_44 : i32
    scf.if %142 {
      %c0_45 = arith.constant 0 : index
      %c0_46 = arith.constant 0 : index
      %143 = vector.load %arg6[%c0_45, %c0_46] : memref<32x128xf32, #tpu.memory_space<vmem>>, vector<32x128xf32>
      %cst_47 = arith.constant dense<0.000000e+00> : vector<8x128xf32>
      %144 = tpu.matmul %137, %143, %cst_47 {dimension_numbers = #tpu.dot_dimension_numbers<[1], [0], [0], [1], [0, 0, 1, 1], [], []>} : vector<8x32xf32>, vector<32x128xf32>, vector<8x128xf32> -> vector<8x128xf32>
      %c0_48 = arith.constant 0 : index
      %c0_49 = arith.constant 0 : index
      %145 = vector.load %arg7[%c0_48, %c0_49] : memref<1x128xf32, #tpu.memory_space<vmem>>, vector<1x128xf32>
      %146 = vector.broadcast %145 : vector<1x128xf32> to vector<8x128xf32>
      %147 = arith.addf %144, %146 : vector<8x128xf32>
      %c0_50 = arith.constant 0 : index
      %c0_51 = arith.constant 0 : index
      %148 = vector.load %arg8[%c0_50, %c0_51] : memref<8x128xf32, #tpu.memory_space<vmem>>, vector<8x128xf32>
      tpu.vector_store %arg8[%c0_50, %c0_51], %147 {strides = array<i32>} : memref<8x128xf32, #tpu.memory_space<vmem>>, vector<8x128xf32>,
    } else {
    }
    return
  }
  func.func @transform_0(%arg0: i32, %arg1: i32) -> (i32, i32, i32) {
    %c0_i32 = arith.constant 0 : i32
    %c0_i32_0 = arith.constant 0 : i32
    return %arg1, %arg0, %c0_i32 : i32, i32, i32
  }
  func.func @transform_1(%arg0: i32, %arg1: i32) -> (i32, i32) {
    %c0_i32 = arith.constant 0 : i32
    %c0_i32_0 = arith.constant 0 : i32
    %c0_i32_1 = arith.constant 0 : i32
    return %c0_i32, %c0_i32_0 : i32, i32
  }
  func.func @transform_2(%arg0: i32, %arg1: i32) -> (i32, i32) {
    %c0_i32 = arith.constant 0 : i32
    %c0_i32_0 = arith.constant 0 : i32
    %c0_i32_1 = arith.constant 0 : i32
    return %c0_i32, %c0_i32_0 : i32, i32
  }
  func.func @transform_3(%arg0: i32, %arg1: i32) -> (i32, i32) {
    %c0_i32 = arith.constant 0 : i32
    %c0_i32_0 = arith.constant 0 : i32
    %c0_i32_1 = arith.constant 0 : i32
    return %c0_i32, %c0_i32_0 : i32, i32
  }
  func.func @transform_4(%arg0: i32, %arg1: i32) -> (i32, i32) {
    %c0_i32 = arith.constant 0 : i32
    %c0_i32_0 = arith.constant 0 : i32
    %c0_i32_1 = arith.constant 0 : i32
    return %c0_i32, %c0_i32_0 : i32, i32
  }
  func.func @transform_5(%arg0: i32, %arg1: i32) -> (i32, i32) {
    %c0_i32 = arith.constant 0 : i32
    %c0_i32_0 = arith.constant 0 : i32
    %c0_i32_1 = arith.constant 0 : i32
    return %c0_i32, %c0_i32_0 : i32, i32
  }
  func.func @transform_6(%arg0: i32, %arg1: i32) -> (i32, i32) {
    %c0_i32 = arith.constant 0 : i32
    %c0_i32_0 = arith.constant 0 : i32
    return %arg0, %c0_i32 : i32, i32
  }
}

</mosaic_0001>

<bundles_post_ra>
// kernel: tpu_custom_call.1
= control target key start
LH: loop header
LB: loop body
LE: loop exit
PB: predicated region body
PF: predicated region fallthrough
CT: control target
= control target key end

     0   :  { %11 = vsyncpa [#allocation6], 0  ;;  %s1949_s0 = inlined_call_operand.hbm [shape: f32[8,8,16], index: 0, kind: input, shape index: {}]   ;;  %s1950_s1 = inlined_call_operand.hbm [shape: f32[16,128], index: 1, kind: input, shape index: {}]   ;;  %s1951_s2 = inlined_call_operand.hbm [shape: f32[32,128], index: 2, kind: input, shape index: {}]   ;;  %s1952_s3 = inlined_call_operand.vmem [shape: f32[1,128], index: 3, kind: input, shape index: {}]   ;;  %s1953_s4 = inlined_call_operand.hbm [shape: f32[32,128], index: 4, kind: input, shape index: {}]   ;;  %s1954_s5 = inlined_call_operand.vmem [shape: f32[1,128], index: 5, kind: input, shape index: {}]   ;;  %s1955_s6 = inlined_call_operand.hbm [shape: f32[8,128], index: 6, kind: output, shape index: {}]  }
   0x1   :  { %13 = vsyncpa [#allocation6 + $0x1], 0 }
   0x2   :  { %14 = vsyncpa [#allocation9], 0 }
   0x3   :  { %15 = vsyncpa [#allocation12], 0 }
   0x4   :  { %16 = vsyncpa [#allocation7], 0  ;;  %s1619_s21 = smov 0   ;;  %s1621_s22 = smov 0  }
   0x5   :  { %s1623_s23 = smov 0   ;;  %s1625_s24 = smov 0  }
   0x6   :  { %s1627_s25 = smov 0   ;;  %s1629_s26 = smov 0  }
   0x7 LB: > { %s1958_s27 = sadd.s32 4294967295, %s1565_s26   ;;  %p56_p0 = scmp.ne.s32.totalorder %s1549_s22, %s1545_s21  ;;  %s1565_s26 = sphi %s1629_s26, %s22_s26   ;;  %s1561_s25 = sphi %s1627_s25, %s1977_s25   ;;  %s1557_s24 = sphi %s1625_s24, %s1976_s24   ;;  %s1553_s23 = sphi %s1623_s23, %s1975_s23   ;;  %s1549_s22 = sphi %s1621_s22, %s1974_s22   ;;  %s1545_s21 = sphi %s1619_s21, %s1973_s21  }
   0x8   : > { %p1651_p1 = scmp.eq.s32.totalorder %s1958_s27, 0  ;;  %p1061_p2 = scmp.ge.s32.totalorder %s1565_s26, 1 }
   0x9   : > { %p198_p3 = scmp.lt.s32.totalorder %s1565_s26, 3  ;;  %s1567_s7 = smov [#allocation8]  }
   0xa   : > { %s1961_s28 = scalar_select %p1651_p1, 1, 0 }
   0xb   : > { %p1659_p4 = por %p1651_p1, %p56_p0  ;;  %p1663_p5 = pnand %p1061_p2, %p198_p3 }
   0xc   : > { %s210_s8 = sshll.u32 %s1567_s7, 4  ;;  %s1568_s10 = smov [#allocation10]   ;;  %s1667_s8 = int_to_ptr.vmem [resolvable:$true] %s210_s8 }
   0xd   : > { %s1962_s29 = scalar_select %p1659_p4, 1, 0 }
   0xe   : > { %s1963_s30 = scalar_select %p1663_p5, 1, 0 }
   0xf   : > { %p1244_p6 = pneg %p1663_p5  ;;  %s223_s11 = sshll.u32 %s1568_s10, 4  ;;  %s1677_s11 = int_to_ptr.vmem [resolvable:$true] %s223_s11 }
  0x10   : > { %s1569_s12 = smov [#allocation11]   ;;  %s1363_s16 = scalar_lea.hbm %s1950_s1, 256 }
  0x11   : > { %p1673_p7 = pnand %p1244_p6, %p1651_p1  ;;  %s1679_s13 = sshll.u32 %s1569_s12, 4  ;;  %s240_s13 = int_to_ptr.vmem [resolvable:$true] %s1679_s13 }
  0x12   : > { %p1364_p8 = scmp.ne.s32.totalorder %s1950_s1, %s1363_s16  ;;  %p1370_p12 = scmp.lt.u32.totalorder %s1363_s16, %s1950_s1 }
  0x13   : > { %p1689_p9 = pneg %p1673_p7 }
  0x15   : > { %p1366_p10 = pnand %p1689_p9, %p1364_p8 }
  0x17   : > { %p1367_p11 = pneg %p1366_p10 }
  0x19   : > { %p1372_p13 = pnand %p1370_p12, %p1367_p11 }
  0x1b   : > { %1375 = shalt.err (!%p1372_p13)
}
  0x1c   : > { %s1376_s7 = scalar_lea.vmem %s1667_s8, 256  ;;  %p1384_p6 = scmp.lt.s32.totalorder %s1667_s8, %s1667_s8 }
  0x1d   : > { %p1377_p0 = scmp.ne.s32.totalorder %s1667_s8, %s1376_s7  ;;  %p1385_p1 = scmp.lt.s32.totalorder %s1376_s7, %s1376_s7 }
  0x1f   : > { %p1379_p2 = pnand %p1377_p0, %p1689_p9  ;;  %p1386_p8 = por %p1385_p1, %p1384_p6 }
  0x21   : > { %p1380_p3 = pneg %p1379_p2 }
  0x23   : > { %p1387_p10 = pnand %p1386_p8, %p1380_p3 }
  0x25   : > { %1390 = shalt.err (!%p1387_p10)
}
  0x26   : > { %s1570_s10 = smov 128   ;;  %s1571_s12 = smov 8  }
  0x27   : > { %1247 = dma.hbm_to_vmem [thread:$0]  (!%p1673_p7), %s1950_s1, 256, %s1667_s8, [#allocation9], %s1570_s10, %s1570_s10, %s1571_s12  }
  0x28   : > { %s1391_s18 = scalar_lea.hbm %s1951_s2, 512 }
  0x29   : > { %p1392_p1 = scmp.ne.s32.totalorder %s1951_s2, %s1391_s18  ;;  %p1398_p13 = scmp.lt.u32.totalorder %s1391_s18, %s1951_s2 }
  0x2b   : > { %p1394_p11 = pnand %p1392_p1, %p1689_p9 }
  0x2d   : > { %p1395_p12 = pneg %p1394_p11 }
  0x2f   : > { %p1400_p0 = pnand %p1398_p13, %p1395_p12 }
  0x31   : > { %1403 = shalt.err (!%p1400_p0)
}
  0x32   : > { %s1404_s8 = scalar_lea.vmem %s1677_s11, 512  ;;  %p1412_p8 = scmp.lt.s32.totalorder %s1677_s11, %s1677_s11 }
  0x33   : > { %p1405_p2 = scmp.ne.s32.totalorder %s1677_s11, %s1404_s8  ;;  %p1413_p10 = scmp.lt.s32.totalorder %s1404_s8, %s1404_s8 }
  0x35   : > { %p1407_p3 = pnand %p1405_p2, %p1689_p9  ;;  %p1414_p1 = por %p1413_p10, %p1412_p8 }
  0x37   : > { %p1408_p6 = pneg %p1407_p3 }
  0x39   : > { %p1415_p11 = pnand %p1414_p1, %p1408_p6 }
  0x3b   : > { %1418 = shalt.err (!%p1415_p11)
}
  0x3c   : > { %1250 = dma.hbm_to_vmem [thread:$0]  (!%p1673_p7), %s1951_s2, 512, %s1677_s11, [#allocation9], %s1570_s10, %s1570_s10, %s1571_s12  }
  0x3d   : > { %s1419_s17 = scalar_lea.hbm %s1953_s4, 512 }
  0x3e   : > { %p1420_p12 = scmp.ne.s32.totalorder %s1953_s4, %s1419_s17  ;;  %p1426_p2 = scmp.lt.u32.totalorder %s1419_s17, %s1953_s4 }
  0x40   : > { %p1422_p13 = pnand %p1420_p12, %p1689_p9 }
  0x42   : > { %p1423_p0 = pneg %p1422_p13 }
  0x44   : > { %p1428_p3 = pnand %p1426_p2, %p1423_p0 }
  0x46   : > { %1431 = shalt.err (!%p1428_p3)
}
  0x47   : > { %s1432_s8 = scalar_lea.vmem %s240_s13, 512  ;;  %p1440_p1 = scmp.lt.s32.totalorder %s240_s13, %s240_s13 }
  0x48   : > { %p1433_p6 = scmp.ne.s32.totalorder %s240_s13, %s1432_s8  ;;  %p1441_p11 = scmp.lt.s32.totalorder %s1432_s8, %s1432_s8 }
  0x4a   : > { %p1435_p8 = pnand %p1433_p6, %p1689_p9  ;;  %p1442_p4 = por %p1441_p11, %p1440_p1 }
  0x4c   : > { %p1436_p10 = pneg %p1435_p8 }
  0x4e   : > { %p1443_p5 = pnand %p1442_p4, %p1436_p10 }
  0x50   : > { %1446 = shalt.err (!%p1443_p5)
}
  0x51   : > { %1253 = dma.hbm_to_vmem [thread:$0]  (!%p1673_p7), %s1953_s4, 512, %s240_s13, [#allocation12], %s1570_s10, %s1570_s10, %s1571_s12  }
  0x52   : > { %s31_s19 = sadd.s32 1, %s1561_s25  ;;  %p50_p4 = scmp.ne.s32.totalorder %s1553_s23, %s1549_s22 }
  0x53   : > { %p32_p5 = scmp.ge.s32.totalorder %s31_s19, 2  ;;  %p51_p9 = scmp.eq.s32.totalorder %s1565_s26, 0 }
  0x54   : > { %s43_s9 = sadd.s32 1, %s1553_s23  ;;  %s256_s14 = sand.u32 1, %s1553_s23  }
  0x55   : > { %s1979_s19 = smov (%p32_p5, %s31_s19), 0  ;;  %p52_p12 = por %p51_p9, %p50_p4 }
  0x56   : > { %p1261_p13 = scmp.lt.s32.totalorder %s1565_s26, 2  ;;  %s38_s15 = ssub.s32 %s1561_s25, %s1979_s19 }
  0x57   : > { %s1066_s16 = sshll.u32 %s256_s14, 5  ;;  %p41_p0 = scmp.eq.s32.totalorder %s38_s15, 0 }
  0x58   : > { %s1095_s17 = sshll.u32 %s1561_s25, 9  ;;  %s260_s18 = scalar_lea.vmem [#allocation5], %s1066_s16 }
  0x59   : > { %s268_s20 = sshll.u32 %s260_s18, 4  ;;  %s1779_s8 = scalar_lea.hbm %s1949_s0, %s1095_s17  ;;  %s1781_s20 = int_to_ptr.vmem [resolvable:$true] %s268_s20 }
  0x5a   : > { %s1774_s21 = scalar_select %p41_p0, %s1553_s23, %s43_s9  }
  0x5b   : > { %p1783_p7 = pnand %p1261_p13, %p52_p12  ;;  %s1787_s27 = scalar_lea.sflag [#allocation6], %s256_s14 }
  0x5c   : > { %s1447_s9 = scalar_lea.hbm %s1779_s8, 512  ;;  %s1452_s17 = scalar_lea.hbm %s1949_s0, 1024 }
  0x5d   : > { %p1448_p2 = scmp.ne.s32.totalorder %s1779_s8, %s1447_s9  ;;  %p1449_p3 = pneg %p1783_p7 }
  0x5e   : > { %p1453_p10 = scmp.lt.u32.totalorder %s1779_s8, %s1949_s0  ;;  %p1454_p1 = scmp.lt.u32.totalorder %s1452_s17, %s1447_s9 }
  0x5f   : > { %p1450_p6 = pnand %p1449_p3, %p1448_p2  ;;  %p1456_p4 = scmp.lt.u32.totalorder %s1447_s9, %s1779_s8 }
  0x60   : > { %p1455_p11 = por %p1454_p1, %p1453_p10 }
  0x61   : > { %p1451_p8 = pneg %p1450_p6 }
  0x62   : > { %p1457_p5 = por %p1456_p4, %p1455_p11 }
  0x64   : > { %p1458_p9 = pnand %p1457_p5, %p1451_p8 }
  0x66   : > { %1461 = shalt.err (!%p1458_p9)
}
  0x67   : > { %s1462_s14 = scalar_lea.vmem %s1781_s20, 512  ;;  %s1572_s7 = smov [#allocation5]  }
  0x68   : > { %p1463_p12 = scmp.ne.s32.totalorder %s1781_s20, %s1462_s14  ;;  %s1467_s15 = sshll.u32 %s1572_s7, 4  ;;  %s1468_s15 = int_to_ptr.vmem [resolvable:$false] %s1467_s15 }
  0x69   : > { %s1469_s16 = scalar_lea.vmem %s1468_s15, 1024  ;;  %p1470_p2 = scmp.lt.s32.totalorder %s1781_s20, %s1468_s15 }
  0x6a   : > { %p1465_p13 = pnand %p1463_p12, %p1449_p3  ;;  %p1471_p6 = scmp.lt.s32.totalorder %s1469_s16, %s1462_s14 }
  0x6c   : > { %p1466_p0 = pneg %p1465_p13  ;;  %p1472_p10 = por %p1471_p6, %p1470_p2 }
  0x6e   : > { %p1473_p1 = pnand %p1472_p10, %p1466_p0 }
  0x70   : > { %1476 = shalt.err (!%p1473_p1)
}
  0x71   : > { %1257 = dma.hbm_to_vmem [thread:$0]  (!%p1783_p7), %s1779_s8, 512, %s1781_s20, %s1787_s27, %s1570_s10, %s1570_s10, %s1571_s12  }
  0x72   : > { %p1967_p3 = scmp.ne.s32.totalorder %s1963_s30, 0 }
  0x73   : > { %s282_s9 = sand.u32 (!%p1967_p3), 1, %s1549_s22   ;;  %p1968_p8 = scmp.ne.s32.totalorder (!%p1967_p3), %s1962_s29, 0 }
  0x74   : > { %280 = sbr.rel (%p1967_p3) target bundleno = 3197 (0xc7d), region = 44  ;;  %s1070_s17 = sshll.u32 (!%p1967_p3), %s282_s9, 5 }
  0x75   : > { %s283_s18 = scalar_lea.sflag (!%p1967_p3), [#allocation6], %s282_s9  ;;  %s1821_s13 = scalar_lea.vmem (!%p1967_p3), [#allocation5], %s1070_s17 }
  0x7b   : > { %1528 = dma.done.wait (%p1968_p8), %s283_s18, 512  }
  0x7c   : > { %1530 = vsyncadd (%p1968_p8), %s283_s18, 4294966784  ;;  %p1969_p11 = scmp.ne.s32.totalorder %s1961_s28, 0 }
  0x7e   : > { %1532 = dma.done.wait (%p1969_p11), [#allocation9], 768  }
  0x7f   : > { %1534 = vsyncadd (%p1969_p11), [#allocation9], 4294966528 }
  0x80   : > { %1536 = dma.done.wait (%p1969_p11), [#allocation12], 512  }
  0x81   : > { %1538 = vsyncadd (%p1969_p11), [#allocation12], 4294966784  ;;  %p1074_p7 = scmp.ne.s32.totalorder %s1557_s24, 0 }
  0x82   : > { %vm327_vm0 = vcmask (!%p1074_p7), 261120   ;;  %v1573_v0 = vmov (!%p1074_p7), 0.0  }
  0x83   : > { %326 = sbr.rel (%p1074_p7) target bundleno = 138 (0x8a), region = 64  ;;  %328 = vst.msk [vmem:[#allocation3] sm:$0xff] (!%p1074_p7), %vm327_vm0, %v1573_v0  ;;  %329 = vst.msk [vmem:[#allocation4] sm:$0xff] (!%p1074_p7), %vm327_vm0, %v1573_v0 }
  0x8a PF: > { %v339_v1 = vld [vmem:[#allocation8] sm:$0xff]  ;;  %v340_v2 = vld [vmem:[#allocation8 + $0x8] sm:$0xff]  ;;  %v330_v3 = vld [vmem:[#allocation10] sm:$0xff]  ;;  %vm347_vm1 = vcmask 130048   ;;  %v1574_v4 = vmov 0.0|0.0   ;;  %vm1575_vm2 = vmmov 0  }
  0x8b   : > { %1196 = vmatprep.subr.bf16.mxu1 %v1574_v4  ;;  %v1192_v5 = vpack.c.bf16 %v340_v2, %v339_v1  ;;  %v331_v6 = vld [vmem:[#allocation10 + $0x8] sm:$0xff]  ;;  %v335_v7 = vld [vmem:[%s1821_s13] sm:$0xff]  ;;  %v333_v10 = vld [vmem:[#allocation10 + $0x18] sm:$0xff]  ;;  %v1576_v11 = vmov 0.0   ;;  %vm452_vm3 = vcmask 261120   ;;  %s1577_s30 = smov 64  }
  0x8c   : > { %v1838_v8 = vpack.c.bf16 %v331_v6, %v330_v3  ;;  %1131 = vmatprep.mubr.msk.f32.mxu0 %vm347_vm1, %v335_v7  ;;  %v332_v9 = vld [vmem:[#allocation10 + $0x10] sm:$0xff]  ;;  %1145 = vmatprep.mubr.msk.f32.mxu1 %vm1575_vm2, %v1576_v11  ;;  %v336_v12 = vld [vmem:[%s1821_s13 + $0x8] sm:$0xff]  ;;  %v449_v14 = vld [vmem:[#allocation3] sm:$0xff]  ;;  %s1578_s10 = smov 32   ;;  %s1579_s12 = smov 96  }
  0x8d   : > { %1193 = vmatprep.subr.bf16.mxu0 %v1192_v5  ;;  %v1200_v13 = vpack.c.bf16 %v333_v10, %v332_v9  ;;  %v1860_v15 = vld [vmem:[%s1952_s3] ss:$0 sm:$0xff]  ;;  %v450_v23 = vld [vmem:[#allocation4] sm:$0xff]  ;;  %p1088_p4 = scmp.ne.s32.totalorder %s1557_s24, 1 }
  0x8e   : > { %1198 = vmatpush3.bf16.msra.mxu1 %v1838_v8  ;;  %1195 = vmatpush3.bf16.msra.mxu0 %v1192_v5  ;;  %v337_v34 = vld [vmem:[%s1821_s13 + $0x10] sm:$0xff]  ;;  %v338_v35 = vld [vmem:[%s1821_s13 + $0x18] sm:$0xff]  ;;  %vm1581_vm4 = vmmov (!%p1088_p4), 0  }
  0x8f   : > { %1199 = vmatprep.subr.bf16.mxu1 %v1574_v4  ;;  %1202 = vmatprep.subr.bf16.mxu0 %v1574_v4 }
  0x91   : > { %1132 = vmatmul.mubr.msk.f32.vlgmr.msra.gmra.mrb[0].mxu0 %vm347_vm1, %v336_v12 }
  0x92   : > { %1201 = vmatpush3.bf16.msra.mxu1 %v1200_v13  ;;  %1204 = vmatpush3.bf16.msra.mxu0 %v1838_v8 }
  0x93   : > { %1205 = vmatprep.subr.bf16.mxu0 %v1574_v4  ;;  %1208 = vmatprep.subr.bf16.mxu1 %v1574_v4 }
  0x94   : > { %1134 = vmatprep.mubr.msk.f32.mxu0 %vm347_vm1, %v337_v34  ;;  %v876_v34 = vld [vmem:[#allocation11 + $0x8] sm:$0xff] (!%p1088_p4) }
  0x95   : > { %1146 = vmatmul.mubr.msk.f32.vlgmr.msra.gmra.mrb[0].mxu1 %vm452_vm3, %v449_v14  ;;  %1135 = vmatmul.mubr.msk.f32.gmra.mrb[2].mxu0 %vm347_vm1, %v338_v35  ;;  %v877_v35 = vld [vmem:[#allocation11 + $0x10] sm:$0xff] (!%p1088_p4) }
  0x96   : > { %1207 = vmatpush3.bf16.msra.mxu0 %v1200_v13  ;;  %1210 = vmatpush3.bf16.msra.mxu1 %v1838_v8 }
  0x97   : > { %1211 = vmatprep.subr.bf16.mxu1 %v1574_v4  ;;  %1167 = vmatprep.mubr.msk.f32.mxu1 %vm1575_vm2, %v1576_v11 }
  0x98   : > { %1214 = vmatprep.subr.bf16.mxu0 %v1574_v4  ;;  %1156 = vmatprep.mubr.msk.f32.mxu0 %vm1575_vm2, %v1576_v11 }
  0x9a   : > { %1213 = vmatpush3.bf16.msra.mxu1 %v1200_v13 }
 0x164   : > { %v1133_v16 = vpop.f32.mrb[0].mxu0 }
 0x165   : > { %v426_v17 = vpop.f32.mrb[1].mxu0  ;;  %v432_v42 = vadd.f32 %v1133_v16, %v1860_v15 }
 0x166   : > { %v427_v18 = vadd.f32 %v1860_v15, %v426_v17 }
 0x168   : > { %v522_v19 = vpop.f32.mrb[0].mxu1  ;;  %v1136_v39 = vpop.f32.mrb[2].mxu0 }
 0x169   : > { %v526_v20 = vadd.f32 %v522_v19, %v427_v18  ;;  %v1147_v21 = vpop.f32.mrb[1].mxu1  ;;  %v436_v40 = vpop.f32.mrb[3].mxu0  ;;  %v442_v14 = vadd.f32 %v1136_v39, %v1860_v15  ;;  %v1582_v39 = vmov (!%p1088_p4), 0.0  }
 0x16a   : > { %v437_v60 = vadd.f32 %v1860_v15, %v436_v40 }
 0x16b   : > { %1331 = vtanh.f32 %v526_v20  ;;  %v1081_v24 = vmul.f32 -1.442695, %v526_v20 }
 0x16d   : > { %1333 = vpow2.f32 %v1081_v24 }
 0x175   : > { %v1332_v22 = vpop.eup %1331 }
 0x176   : > { %540 = vrot.lane.b32.xlu0 %v1332_v22, %s1577_s30 }
 0x177   : > { %v1334_v25 = vpop.eup %1333 }
 0x178   : > { %v530_v26 = vadd.f32 1.0, %v1334_v25 }
 0x17a   : > { %535 = vrot.lane.b32.xlu0 %v450_v23, %s1578_s10  ;;  %1335 = vrcp.f32 %v530_v26 }
 0x184   : > { %v1336_v27 = vpop.eup %1335 }
 0x1e8   : > { %v541_v28 = vpop.permute.xlu0 %540 }
 0x1e9   : > { %v543_v29 = vmul.f32 %v1336_v27, %v541_v28 }
 0x1eb   : > { %545 = vrot.lane.b32.xlu1 %v543_v29, %s1578_s10 }
 0x1ec   : > { %v536_v30 = vpop.permute.xlu0 %535 }
 0x1ed   : > { %v538_v31 = vmul.f32 %v1336_v27, %v536_v30 }
 0x25d   : > { %v546_v32 = vpop.permute.xlu1 %545 }
 0x25e   : > { %v548_v33 = vadd.f32 %v546_v32, %v538_v31 }
 0x260   : > { %1337 = vtanh.f32 %v548_v33 }
 0x26a   : > { %v1338_v36 = vpop.eup %1337 }
 0x26b   : > { %551 = vrot.lane.b32.xlu1 %v1338_v36, %s1577_s30  ;;  %v1580_v36 = vmov (!%p1088_p4), 0.0|0.0  }
 0x2dd   : > { %v552_v37 = vpop.permute.xlu1 %551 }
 0x2de   : > { %v554_v38 = vmul.f32 %v1336_v27, %v552_v37 }
 0x2e0   : > { %558 = vrot.lane.b32.xlu0 %v554_v38, %s1578_s10  ;;  %v878_v38 = vld [vmem:[#allocation11 + $0x18] sm:$0xff] (!%p1088_p4) }
 0x2e1   : > { %v1224_v40 = vpack.c.bf16 (!%p1088_p4), %v878_v38, %v877_v35 }
 0x352   : > { %v559_v41 = vpop.permute.xlu0 %558 }
 0x353   : > { %1157 = vmatmul.mubr.msk.f32.vlgmr.msra.gmra.mrb[4].mxu0 %vm452_vm3, %v559_v41  ;;  %v1089_v41 = vld [vmem:[%s1954_s5] ss:$0 sm:$0xff] (!%p1088_p4) }
 0x354   : > { %1216 = vmatpush3.bf16.msra.mxu0 %v1838_v8  ;;  %1178 = vmatprep.mubr.msk.f32.mxu0 %vm1575_vm2, %v1576_v11 }
 0x355   : > { %1217 = vmatprep.subr.bf16.mxu0 %v1574_v4 }
 0x358   : > { %1219 = vmatpush3.bf16.msra.mxu0 %v1200_v13 }
 0x359   : > { %1220 = vmatprep.subr.bf16.mxu0 (!%p1088_p4), %v1580_v36 }
 0x426   : > { %v628_v43 = vpop.f32.mrb[4].mxu0 }
 0x427   : > { %v632_v44 = vadd.f32 %v628_v43, %v432_v42  ;;  %v1158_v45 = vpop.f32.mrb[5].mxu0 }
 0x429   : > { %1339 = vtanh.f32 %v632_v44  ;;  %v1083_v47 = vmul.f32 -1.442695, %v632_v44 }
 0x42b   : > { %1341 = vpow2.f32 %v1083_v47 }
 0x433   : > { %v1340_v46 = vpop.eup %1339 }
 0x434   : > { %642 = vrot.lane.b32.xlu1 %v1340_v46, %s1577_s30 }
 0x435   : > { %v1342_v48 = vpop.eup %1341 }
 0x436   : > { %v636_v49 = vadd.f32 1.0, %v1342_v48 }
 0x438   : > { %1343 = vrcp.f32 %v636_v49 }
 0x442   : > { %v1344_v50 = vpop.eup %1343 }
 0x443   : > { %v640_v53 = vmul.f32 %v1344_v50, %v548_v33  ;;  %v875_v33 = vld [vmem:[#allocation11] sm:$0xff] (!%p1088_p4) }
 0x444   : > { %v1221_v37 = vpack.c.bf16 (!%p1088_p4), %v876_v34, %v875_v33 }
 0x4a6   : > { %v643_v51 = vpop.permute.xlu1 %642 }
 0x4a7   : > { %v645_v52 = vmul.f32 %v1344_v50, %v643_v51 }
 0x4a9   : > { %647 = vrot.lane.b32.xlu0 %v645_v52, %s1578_s10 }
 0x51b   : > { %v648_v54 = vpop.permute.xlu0 %647 }
 0x51c   : > { %v650_v55 = vadd.f32 %v648_v54, %v640_v53 }
 0x51e   : > { %1345 = vtanh.f32 %v650_v55 }
 0x528   : > { %v1346_v56 = vpop.eup %1345 }
 0x529   : > { %653 = vrot.lane.b32.xlu1 %v1346_v56, %s1577_s30 }
 0x59b   : > { %v654_v57 = vpop.permute.xlu1 %653 }
 0x59c   : > { %v656_v58 = vmul.f32 %v1344_v50, %v654_v57 }
 0x59e   : > { %660 = vrot.lane.b32.xlu0 %v656_v58, %s1578_s10 }
 0x610   : > { %v661_v59 = vpop.permute.xlu0 %660 }
 0x611   : > { %1168 = vmatmul.mubr.msk.f32.vlgmr.msra.gmra.mrb[2].mxu1 %vm452_vm3, %v661_v59 }
 0x6e4   : > { %v730_v61 = vpop.f32.mrb[2].mxu1 }
 0x6e5   : > { %v734_v62 = vadd.f32 %v730_v61, %v437_v60  ;;  %v1169_v63 = vpop.f32.mrb[3].mxu1 }
 0x6e7   : > { %1347 = vtanh.f32 %v734_v62  ;;  %v1085_v1 = vmul.f32 -1.442695, %v734_v62 }
 0x6e9   : > { %1349 = vpow2.f32 %v1085_v1 }
 0x6f1   : > { %v1348_v0 = vpop.eup %1347 }
 0x6f2   : > { %744 = vrot.lane.b32.xlu1 %v1348_v0, %s1577_s30 }
 0x6f3   : > { %v1350_v2 = vpop.eup %1349 }
 0x6f4   : > { %v738_v3 = vadd.f32 1.0, %v1350_v2 }
 0x6f6   : > { %1351 = vrcp.f32 %v738_v3 }
 0x700   : > { %v1352_v4 = vpop.eup %1351 }
 0x701   : > { %v742_v7 = vmul.f32 %v1352_v4, %v650_v55 }
 0x764   : > { %v745_v5 = vpop.permute.xlu1 %744 }
 0x765   : > { %v747_v6 = vmul.f32 %v1352_v4, %v745_v5 }
 0x767   : > { %749 = vrot.lane.b32.xlu0 %v747_v6, %s1578_s10 }
 0x7d9   : > { %v750_v8 = vpop.permute.xlu0 %749 }
 0x7da   : > { %v752_v9 = vadd.f32 %v750_v8, %v742_v7 }
 0x7dc   : > { %1353 = vtanh.f32 %v752_v9 }
 0x7e6   : > { %v1354_v10 = vpop.eup %1353 }
 0x7e7   : > { %755 = vrot.lane.b32.xlu1 %v1354_v10, %s1577_s30 }
 0x859   : > { %v756_v11 = vpop.permute.xlu1 %755 }
 0x85a   : > { %v758_v12 = vmul.f32 %v1352_v4, %v756_v11 }
 0x85c   : > { %762 = vrot.lane.b32.xlu0 %v758_v12, %s1578_s10 }
 0x8ce   : > { %v763_v13 = vpop.permute.xlu0 %762 }
 0x8cf   : > { %1179 = vmatmul.mubr.msk.f32.vlgmr.msra.gmra.mrb[6].mxu0 %vm452_vm3, %v763_v13 }
 0x8d0   : > { %1189 = vmatprep.mubr.msk.f32.mxu0 (!%p1088_p4), %vm1581_vm4, %v1582_v39  ;;  %1222 = vmatpush3.bf16.msra.mxu0 (!%p1088_p4), %v1221_v37 }
 0x8d1   : > { %1223 = vmatprep.subr.bf16.mxu0 (!%p1088_p4), %v1580_v36 }
 0x8d4   : > { %1225 = vmatpush3.bf16.msra.mxu0 (!%p1088_p4), %v1224_v40 }
 0x9a2   : > { %v832_v16 = vpop.f32.mrb[6].mxu0 }
 0x9a3   : > { %v836_v17 = vadd.f32 %v832_v16, %v442_v14  ;;  %v1180_v18 = vpop.f32.mrb[7].mxu0 }
 0x9a5   : > { %1355 = vtanh.f32 %v836_v17  ;;  %v1087_v20 = vmul.f32 -1.442695, %v836_v17 }
 0x9a7   : > { %1357 = vpow2.f32 %v1087_v20 }
 0x9af   : > { %v1356_v19 = vpop.eup %1355 }
 0x9b0   : > { %846 = vrot.lane.b32.xlu1 %v1356_v19, %s1577_s30 }
 0x9b1   : > { %v1358_v21 = vpop.eup %1357 }
 0x9b2   : > { %v840_v22 = vadd.f32 1.0, %v1358_v21 }
 0x9b4   : > { %1359 = vrcp.f32 %v840_v22 }
 0x9be   : > { %v1360_v23 = vpop.eup %1359 }
 0x9bf   : > { %v844_v26 = vmul.f32 %v1360_v23, %v752_v9 }
 0xa22   : > { %v847_v24 = vpop.permute.xlu1 %846 }
 0xa23   : > { %v849_v25 = vmul.f32 %v1360_v23, %v847_v24 }
 0xa25   : > { %851 = vrot.lane.b32.xlu0 %v849_v25, %s1578_s10 }
 0xa97   : > { %v852_v27 = vpop.permute.xlu0 %851 }
 0xa98   : > { %v854_v15 = vadd.f32 %v852_v27, %v844_v26 }
 0xa9a   : > { %1361 = vtanh.f32 %v854_v15 }
 0xaa4   : > { %v1362_v28 = vpop.eup %1361 }
 0xaa5   : > { %857 = vrot.lane.b32.xlu1 %v1362_v28, %s1577_s30 }
 0xaa9   : > { %867 = vrot.lane.b32.xlu1 %v854_v15, %s1579_s12 }
 0xb17   : > { %v858_v29 = vpop.permute.xlu1 %857 }
 0xb18   : > { %v860_v30 = vmul.f32 %v1360_v23, %v858_v29 }
 0xb1a   : > { %862 = vrot.lane.b32.xlu0 %v860_v30, %s1578_s10 }
 0xb1b   : > { %v868_v31 = vpop.permute.xlu1 %867 }
 0xb1c   : > { %870 = vst.msk [vmem:[#allocation4] sm:$0xff] %vm452_vm3, %v868_v31 }
 0xb87   : > { %874 = sbr.rel (%p1088_p4) target bundleno = 3172 (0xc64), region = 68 }
 0xb8c   : > { %v863_v32 = vpop.permute.xlu0 %862 }
 0xb8d   : > { %865 = vst.msk [vmem:[#allocation3] sm:$0xff] %vm452_vm3, %v863_v32  ;;  %1190 = vmatmul.mubr.msk.f32.vlgmr.msra.gmra.mrb[0].mxu0 (!%p1088_p4), %vm452_vm3, %v863_v32 }
 0xc60   : > { %v954_v42 = vpop.f32.mrb[0].mxu0 }
 0xc61   : > { %v955_v43 = vadd.f32 %v1089_v41, %v954_v42  ;;  %v1191_v44 = vpop.f32.mrb[1].mxu0 }
 0xc63   : > { %958 = vst [vmem:[#allocation13] sm:$0xff] %v955_v43 }
 0xc64 PF: > { %s1970_s24 = sadd.s32 4294967295, %s1565_s26   ;;  %s1583_s27 = smov [#allocation13]  }
 0xc65   : > { %p1905_p5 = scmp.eq.s32.totalorder %s1970_s24, 1  ;;  %s968_s14 = sshll.u32 %s1583_s27, 4  ;;  %s969_s14 = int_to_ptr.vmem [resolvable:$true] %s968_s14 }
 0xc66   : > { %s1477_s7 = scalar_lea.vmem %s969_s14, 128  ;;  %p1484_p0 = scmp.lt.s32.totalorder %s969_s14, %s969_s14 }
 0xc67   : > { %p1478_p9 = scmp.ne.s32.totalorder %s969_s14, %s1477_s7  ;;  %p1485_p2 = scmp.lt.s32.totalorder %s1477_s7, %s1477_s7 }
 0xc69   : > { %p1479_p12 = pnand %p1478_p9, %p1905_p5  ;;  %p1486_p6 = por %p1485_p2, %p1484_p0 }
 0xc6b   : > { %p1480_p13 = pneg %p1479_p12 }
 0xc6d   : > { %p1487_p10 = pnand %p1486_p6, %p1480_p13 }
 0xc6f   : > { %1490 = shalt.err (!%p1487_p10)
}
 0xc70   : > { %s1491_s9 = scalar_lea.hbm %s1955_s6, 128 }
 0xc71   : > { %p1492_p1 = scmp.ne.s32.totalorder %s1955_s6, %s1491_s9  ;;  %p1497_p11 = scmp.lt.u32.totalorder %s1491_s9, %s1955_s6 }
 0xc73   : > { %p1493_p3 = pnand %p1492_p1, %p1905_p5 }
 0xc75   : > { %p1494_p8 = pneg %p1493_p3 }
 0xc77   : > { %p1499_p7 = pnand %p1497_p11, %p1494_p8 }
 0xc79   : > { %1502 = shalt.err (!%p1499_p7)
}
 0xc7a   : > { %1241 = dma.vmem_to_hbm [thread:$0]  (%p1905_p5), %s969_s14, 128, %s1955_s6, [#allocation7]  }
 0xc7b   : > { %1540 = dma.done.wait (%p1905_p5), [#allocation7], 128  }
 0xc7c   : > { %1542 = vsyncadd (%p1905_p5), [#allocation7], 4294967168 }
 0xc7d PF: > { %s22_s26 = sadd.s32 1, %s1565_s26   ;;  %s1972_s10 = smov %s1774_s21 }
 0xc7e   : > { %p19_p4 = scmp.ge.s32.totalorder %s22_s26, 4   ;;  %s1973_s21 = smov %s1549_s22 }
 0xc7f   : > { %s1974_s22 = smov %s1553_s23  ;;  %s1975_s23 = smov %s1972_s10 }
 0xc80   : > { %s1976_s24 = smov %s1561_s25  ;;  %s1977_s25 = smov %s1979_s19 }
 0xc81   :  { %21 = sbr.rel (!%p19_p4) target bundleno = 7 (0x7), region = 105 }
 0xc88   :  { %981 = vsyncpa [#allocation6], 1 }
 0xc89   :  { %983 = vsyncpa [#allocation6 + $0x1], 1 }
 0xc8a   :  { %984 = vsyncpa [#allocation9], 1 }
 0xc8b   :  { %985 = vsyncpa [#allocation12], 1 }
 0xc8c   :  { %986 = vsyncpa [#allocation7], 1 }
 0xc8d   :  { %988 = vsyncpa [#allocation7 + $0x1], 1 }

</bundles_post_ra>
